<compile_context>
chip_gen: v5e
topology: v5e:2x2
jax: 0.10.0
libtpu: 0.0.40
codegen_flags: <defaults>
</compile_context>

<pallas_src>
import functools

import jax
import jax.numpy as jnp
from jax import lax
from jax.experimental import pallas as pl
from jax.experimental.pallas import tpu as pltpu


def _focal_loss_kernel(logits_ref, targets_ref, alpha_ref, partial_ref, *,
                       gamma: float, true_b: int, tb: int, needs_mask: bool):
    logits = logits_ref[...].astype(jnp.float32)   # (TB, C)  widen in-kernel
    targets = targets_ref[...]                     # (TB, 1)  int32
    a = alpha_ref[...].astype(jnp.float32)         # (TB, 1)  per-sample alpha

    TB, C = logits.shape

    # log-softmax of the target class (numerically safe, no divide, no full
    # probability matrix).
    m = jnp.max(logits, axis=1, keepdims=True)                          # (TB, 1)
    lse = jnp.log(jnp.sum(jnp.exp(logits - m), axis=1, keepdims=True))  # (TB, 1)

    # Target-class logit via where-select (no one-hot cast + multiply).
    col = lax.broadcasted_iota(jnp.int32, (TB, C), 1)
    sel = jnp.sum(jnp.where(col == targets, logits, 0.0),
                  axis=1, keepdims=True)                                # x[target]

    log_p = sel - m - lse                                               # (TB, 1)
    # 1 - exp(log_p) matches the PyTorch module's `1 - probs` bit-behavior;
    # -expm1(log_p) would be more accurate for p ~ 1.
    one_minus_p = 1.0 - jnp.exp(log_p)
    if float(gamma).is_integer():
        focal = lax.integer_pow(one_minus_p, int(gamma))
    else:
        focal = jnp.power(one_minus_p, jnp.float32(gamma))

    batch_loss = -a * focal * log_p                                     # (TB, 1)

    def _store(loss):
        s = jnp.sum(loss, keepdims=True).reshape(1, 1, 1)               # (1,1,1)
        partial_ref[...] = jnp.broadcast_to(s, partial_ref.shape)       # (1,8,128)

    if needs_mask:
        # Mask padded rows of the last (partial) block only; steady-state
        # iterations take the unmasked path.
        last = pl.num_programs(0) - 1

        @pl.when(pl.program_id(0) == last)
        def _():
            row = (pl.program_id(0) * tb
                   + lax.broadcasted_iota(jnp.int32, (TB, 1), 0))
            _store(jnp.where(row < true_b, batch_loss, 0.0))

        @pl.when(pl.program_id(0) != last)
        def _():
            _store(batch_loss)
    else:
        _store(batch_loss)


def _vmem_caps():
    """(physical_vmem, vmem_limit_bytes, per-tile working-set budget)."""
    try:
        cap = int(pltpu.get_tpu_info().vmem_capacity_bytes)
    except Exception:
        cap = 64 * 1024 * 1024  # be conservative (v7x-sized)
    if cap >= 100 * 1024 * 1024:                     # v5e / v6e: 128 MiB
        return cap, 80 * 1024 * 1024, 56 * 1024 * 1024
    return cap, 32 * 1024 * 1024, 22 * 1024 * 1024   # v7x: 64 MiB per TC


def _pick_tb(B: int, C: int, itemsize: int, budget: int) -> int:
    """Batch-tile size from the f32-aware in-kernel footprint."""
    c_pad = max(128, ((C + 127) // 128) * 128)
    # 2x double-buffered native-dtype input + f32 widened copy + ~2 full-tile
    # f32 temporaries (exp / where paths).
    bytes_per_row = c_pad * (2 * itemsize + 12)
    tb = (budget // bytes_per_row) // 8 * 8
    tb = max(8, min(tb, 2048))
    # Megacore (v7x): keep >= 2 batch blocks when the batch allows it so the
    # "parallel" grid axis shards across both TensorCores.
    if B >= 16:
        half = (((B + 1) // 2) + 7) // 8 * 8   # round_up(cdiv(B, 2), 8)
        tb = min(tb, half)
    if tb >= B:
        tb = B  # single full-extent block; no row padding / masking needed
    return tb


def focal_loss(inputs, targets, alpha, gamma: float = 2.0,
               size_average: bool = True):
    """JAX/Pallas equivalent of FocalLoss.forward.

    inputs:  (B, C) float logits (any float dtype; widened in-kernel)
    targets: (B,)   integer class ids
    alpha:   (C, 1) or (C,) per-class scalar factors (module default: ones)
    """
    B, C = inputs.shape
    itemsize = inputs.dtype.itemsize
    targets_i32 = targets.astype(jnp.int32)
    targets_2d = targets_i32.reshape(B, 1)
    # Wrapper-side per-sample alpha gather (tiny, overlaps with kernel launch).
    alpha_per_sample = (alpha.reshape(-1).astype(jnp.float32)[targets_i32]
                        ).reshape(B, 1)

    cap, vmem_limit, budget = _vmem_caps()
    tb = _pick_tb(B, C, itemsize, budget)
    nb = pl.cdiv(B, tb)
    needs_mask = (B % tb) != 0

    # If a single minimum-height tile still exceeds the nominal limit (very
    # wide C), raise the scoped limit up to physical-VMEM-minus-headroom.
    c_pad = max(128, ((C + 127) // 128) * 128)
    footprint = tb * c_pad * (2 * itemsize + 12)
    vmem_limit = max(vmem_limit,
                     min(footprint + (2 << 20), cap - (8 << 20)))

    kernel = functools.partial(_focal_loss_kernel, gamma=float(gamma),
                               true_b=B, tb=tb, needs_mask=needs_mask)

    cost = pl.CostEstimate(
        flops=7 * B * C,
        transcendentals=B * C,
        bytes_accessed=B * C * itemsize + 12 * B + nb * 8 * 128 * 4,
    )

    partials = pl.pallas_call(
        kernel,
        out_shape=jax.ShapeDtypeStruct((nb, 8, 128), jnp.float32),
        grid=(nb,),
        in_specs=[
            pl.BlockSpec((tb, C), lambda i: (i, 0)),   # logits, native dtype
            pl.BlockSpec((tb, 1), lambda i: (i, 0)),   # targets
            pl.BlockSpec((tb, 1), lambda i: (i, 0)),   # per-sample alpha
        ],
        # (8, 128)-native, lane/sublane-dense partial-sum block per grid step.
        out_specs=pl.BlockSpec((1, 8, 128), lambda i: (i, 0, 0)),
        compiler_params=pltpu.CompilerParams(
            dimension_semantics=("parallel",),
            vmem_limit_bytes=int(vmem_limit),
        ),
        cost_estimate=cost,
    )(inputs, targets_2d, alpha_per_sample)

    total = jnp.sum(partials[:, 0, 0])
    if size_average:
        total = total / jnp.float32(B)
    return total


def _focal_loss_ref(inputs, targets, alpha, gamma=2.0, size_average=True):
    """Pure-JAX reference mirroring the PyTorch module, for verification."""
    probs_full = jax.nn.softmax(inputs.astype(jnp.float32), axis=1)
    class_mask = jax.nn.one_hot(targets, inputs.shape[1], dtype=jnp.float32)
    probs = jnp.sum(probs_full * class_mask, axis=1, keepdims=True)
    a = alpha.reshape(-1)[targets].reshape(-1, 1)
    batch_loss = -a * jnp.power(1.0 - probs, gamma) * jnp.log(probs)
    return jnp.mean(batch_loss) if size_average else jnp.sum(batch_loss)


if __name__ == "__main__":
    B, C = 8, 16  # batch, class_num

    key = jax.random.PRNGKey(0)
    k_logits, k_targets = jax.random.split(key)
    logits = jax.random.normal(k_logits, (B, C), dtype=jnp.float32)
    targets = jax.random.randint(k_targets, (B,), 0, C, dtype=jnp.int32)

    # Deterministic parameter init matching FocalLoss.__init__ default:
    # alpha = ones(class_num, 1), gamma = 2, size_average = True
    alpha = jnp.ones((C, 1), dtype=jnp.float32)
    gamma = 2.0
    size_average = True

    loss = focal_loss(logits, targets, alpha, gamma=gamma,
                      size_average=size_average)
    loss = jax.block_until_ready(loss)

    ref = _focal_loss_ref(logits, targets, alpha, gamma=gamma,
                          size_average=size_average)
    assert jnp.allclose(loss, ref, rtol=1e-5, atol=1e-6), (loss, ref)

    print("KERNEL_OK")
</pallas_src>

<mosaic_0001>
module attributes {stable_mosaic.version = 11 : i64} {
  func.func @_focal_loss_kernel(%arg0: i32, %arg1: memref<8x16xf32, #tpu.memory_space<vmem>>, %arg2: memref<8x1xi32, #tpu.memory_space<vmem>>, %arg3: memref<8x1xf32, #tpu.memory_space<vmem>>, %arg4: memref<1x8x128xf32, #tpu.memory_space<vmem>>) attributes {dimension_semantics = [#tpu.dimension_semantics<parallel>], iteration_bounds = array<i64: 1>, scalar_prefetch = 0 : i64, scratch_operands = 0 : i64, tpu.core_type = #tpu.core_type<tc>, window_params = [{transform_indices = @transform_0, window_bounds = array<i64: 8, 16>}, {transform_indices = @transform_1, window_bounds = array<i64: 8, 1>}, {transform_indices = @transform_2, window_bounds = array<i64: 8, 1>}, {transform_indices = @transform_3, window_bounds = array<i64: 1, 8, 128>}]} {
    %c0 = arith.constant 0 : index
    %c0_0 = arith.constant 0 : index
    %0 = vector.load %arg1[%c0, %c0_0] : memref<8x16xf32, #tpu.memory_space<vmem>>, vector<8x16xf32>
    %c0_1 = arith.constant 0 : index
    %c0_2 = arith.constant 0 : index
    %1 = vector.load %arg2[%c0_1, %c0_2] : memref<8x1xi32, #tpu.memory_space<vmem>>, vector<8x1xi32>
    %c0_3 = arith.constant 0 : index
    %c0_4 = arith.constant 0 : index
    %2 = vector.load %arg3[%c0_3, %c0_4] : memref<8x1xf32, #tpu.memory_space<vmem>>, vector<8x1xf32>
    %cst = arith.constant dense<0xFF800000> : vector<8xf32>
    %3 = vector.multi_reduction <maximumf>, %0, %cst [1] : vector<8x16xf32> to vector<8xf32>
    %4 = vector.shape_cast %3 : vector<8xf32> to vector<8x1xf32>
    %5 = vector.broadcast %4 : vector<8x1xf32> to vector<8x16xf32>
    %6 = arith.subf %0, %5 : vector<8x16xf32>
    %7 = math.exp %6 : vector<8x16xf32>
    %cst_5 = arith.constant dense<0.000000e+00> : vector<8xf32>
    %8 = vector.multi_reduction <add>, %7, %cst_5 [1] : vector<8x16xf32> to vector<8xf32>
    %9 = vector.shape_cast %8 : vector<8xf32> to vector<8x1xf32>
    %10 = math.log %9 : vector<8x1xf32>
    %11 = tpu.iota {dimensions = array<i32: 1>} : vector<8x16xi32>
    %12 = vector.broadcast %1 : vector<8x1xi32> to vector<8x16xi32>
    %13 = arith.cmpi eq, %11, %12 : vector<8x16xi32>
    %cst_6 = arith.constant 0.000000e+00 : f32
    %14 = vector.broadcast %cst_6 : f32 to vector<8x16xf32>
    %15 = arith.select %13, %0, %14 : vector<8x16xi1>, vector<8x16xf32>
    %cst_7 = arith.constant dense<0.000000e+00> : vector<8xf32>
    %16 = vector.multi_reduction <add>, %15, %cst_7 [1] : vector<8x16xf32> to vector<8xf32>
    %17 = vector.shape_cast %16 : vector<8xf32> to vector<8x1xf32>
    %18 = arith.subf %17, %4 : vector<8x1xf32>
    %19 = arith.subf %18, %10 : vector<8x1xf32>
    %20 = math.exp %19 : vector<8x1xf32>
    %cst_8 = arith.constant 1.000000e+00 : f32
    %21 = vector.broadcast %cst_8 : f32 to vector<8x1xf32>
    %22 = arith.subf %21, %20 : vector<8x1xf32>
    %23 = arith.mulf %22, %22 : vector<8x1xf32>
    %cst_9 = arith.constant 0.000000e+00 : f32
    %24 = vector.broadcast %cst_9 : f32 to vector<8x1xf32>
    %25 = arith.subf %24, %2 : vector<8x1xf32>
    %26 = arith.mulf %25, %23 : vector<8x1xf32>
    %27 = arith.mulf %26, %19 : vector<8x1xf32>
    %28 = vector.shape_cast %27 : vector<8x1xf32> to vector<1x8x1xf32>
    %cst_10 = arith.constant dense<0.000000e+00> : vector<1xf32>
    %29 = vector.multi_reduction <add>, %28, %cst_10 [1, 2] : vector<1x8x1xf32> to vector<1xf32>
    %30 = vector.shape_cast %29 : vector<1xf32> to vector<1x1x1xf32>
    %31 = vector.extract %30[0, 0, 0] : f32 from vector<1x1x1xf32>
    %32 = vector.broadcast %31 : f32 to vector<1x1xf32>
    %33 = vector.shape_cast %32 : vector<1x1xf32> to vector<1x1x1xf32>
    %34 = vector.shape_cast %33 : vector<1x1x1xf32> to vector<1x1x1xf32>
    %35 = vector.broadcast %34 : vector<1x1x1xf32> to vector<1x8x128xf32>
    %c0_11 = arith.constant 0 : index
    %c0_12 = arith.constant 0 : index
    %c0_13 = arith.constant 0 : index
    %36 = vector.load %arg4[%c0_11, %c0_12, %c0_13] : memref<1x8x128xf32, #tpu.memory_space<vmem>>, vector<1x8x128xf32>
    tpu.vector_store %arg4[%c0_11, %c0_12, %c0_13], %35 {strides = array<i32>} : memref<1x8x128xf32, #tpu.memory_space<vmem>>, vector<1x8x128xf32>,
    return
  }
  func.func @transform_0(%arg0: i32) -> (i32, i32) {
    %c0_i32 = arith.constant 0 : i32
    %c0_i32_0 = arith.constant 0 : i32
    return %arg0, %c0_i32 : i32, i32
  }
  func.func @transform_1(%arg0: i32) -> (i32, i32) {
    %c0_i32 = arith.constant 0 : i32
    %c0_i32_0 = arith.constant 0 : i32
    return %arg0, %c0_i32 : i32, i32
  }
  func.func @transform_2(%arg0: i32) -> (i32, i32) {
    %c0_i32 = arith.constant 0 : i32
    %c0_i32_0 = arith.constant 0 : i32
    return %arg0, %c0_i32 : i32, i32
  }
  func.func @transform_3(%arg0: i32) -> (i32, i32, i32) {
    %c0_i32 = arith.constant 0 : i32
    %c0_i32_0 = arith.constant 0 : i32
    %c0_i32_1 = arith.constant 0 : i32
    return %arg0, %c0_i32, %c0_i32_0 : i32, i32, i32
  }
}

</mosaic_0001>

<bundles_post_ra>
// kernel: tpu_custom_call.1
= control target key start
LH: loop header
LB: loop body
LE: loop exit
PB: predicated region body
PF: predicated region fallthrough
CT: control target
= control target key end

     0   :  { %vm18_vm0 = vcmask 130048   ;;  %s152_s0 = inlined_call_operand.vmem [shape: f32[8,16], index: 0, kind: input, shape index: {}]   ;;  %s153_s1 = inlined_call_operand.vmem [shape: s32[8,1], index: 1, kind: input, shape index: {}]   ;;  %s154_s2 = inlined_call_operand.vmem [shape: f32[8,1], index: 2, kind: input, shape index: {}]   ;;  %s155_s3 = inlined_call_operand.hbm [shape: f32[1,8,128], index: 3, kind: output, shape index: {}]  }
   0x1   :  { %v15_v0 = vld [vmem:[%s152_s0] sm:$0xff] }
   0x2   :  { %8 = vsyncpa [#allocation3], 0  ;;  %v19_v1 = vsel %vm18_vm0, %v15_v0, -inf  ;;  %v115_v2 = vmov 0   ;;  %v16_v3 = vld [vmem:[%s153_s1] sm:$0xff]  ;;  %v30_v9 = vlaneseq  ;;  %vm49_vm2 = vcmask 7168  }
   0x3   :  { %82 = vset.pattern.permute.xlu0 %v115_v2  ;;  %v17_v21 = vld [vmem:[%s154_s2] sm:$0xff]  ;;  %s116_s16 = smov [#allocation2]   ;;  %s69_s19 = sshll.u32 %s155_s3, 4  ;;  %s70_s19 = int_to_ptr.hbm [resolvable:$true] %s69_s19 }
   0x4   :  { %20 = vmax.xlane.f32.xlu0 %v19_v1  ;;  %v31_v10 = vand.u32 127, %v30_v9  ;;  %v46_v24 = vsub.f32 0.0, %v17_v21  ;;  %s67_s17 = sshll.u32 %s116_s16, 4  ;;  %s68_s17 = int_to_ptr.vmem [resolvable:$true] %s67_s17 }
  0x18   :  { %33 = vperm.xlu0 %82, %v16_v3  }
  0x77   :  { %v21_v4 = vpop.xlane.xlu0 %20 }
  0x78   :  { %v22_v5 = vsub.f32 %v15_v0, %v21_v4 }
  0x7a   :  { %v23_v6 = vmul.f32 1.442695, %v22_v5 }
  0x7c   :  { %83 = vpow2.f32 %v23_v6 }
  0x82   :  { %v84_v7 = vpop.eup %83 }
  0x83   :  { %v25_v8 = vsel %vm18_vm0, %v84_v7, 0.0 }
  0x84   :  { %26 = vadd.xlane.f32.xlu1 %v25_v8 }
  0x8a   :  { %v34_v11 = vpop.permute.xlu0 %33 }
  0x8b   :  { %vm35_vm1 = vcmp.eq.s32.totalorder %v31_v10, %v34_v11 }
  0x8c   :  { %v36_v12 = vsel %vm35_vm1, %v15_v0, 0.0 }
  0x8d   :  { %v37_v13 = vsel %vm18_vm0, %v36_v12, 0.0 }
  0x8e   :  { %38 = vadd.xlane.f32.xlu1 %v37_v13 }
  0xf7   :  { %v27_v14 = vpop.xlane.xlu1 %26 }
  0xf8   :  { %85 = vlog2.f32 %v27_v14 }
  0xfe   :  { %v86_v15 = vpop.eup %85 }
  0xff   :  { %v29_v17 = vmul.f32 0.6931472, %v86_v15 }
 0x101   :  { %v39_v16 = vpop.xlane.xlu1 %38 }
 0x102   :  { %v40_v18 = vsub.f32 %v39_v16, %v21_v4 }
 0x104   :  { %v41_v19 = vsub.f32 %v40_v18, %v29_v17 }
 0x106   :  { %v42_v20 = vmul.f32 1.442695, %v41_v19 }
 0x108   :  { %87 = vpow2.f32 %v42_v20 }
 0x10e   :  { %v88_v22 = vpop.eup %87 }
 0x10f   :  { %v44_v23 = vsub.f32 1.0, %v88_v22 }
 0x111   :  { %v45_v25 = vmul.f32 %v44_v23, %v44_v23 }
 0x113   :  { %v47_v26 = vmul.f32 %v46_v24, %v45_v25 }
 0x115   :  { %v48_v27 = vmul.f32 %v47_v26, %v41_v19 }
 0x117   :  { %v50_v28 = vsel %vm49_vm2, %v48_v27, 0.0 }
 0x118   :  { %51 = vadd.xlane.f32.xlu2 %v50_v28 }
 0x18b   :  { %v52_v29 = vpop.xlane.xlu2 %51 }
 0x18c   :  { %v53_v30 = vrot.slane %v52_v29, 4 }
 0x18e   :  { %v54_v31 = vadd.f32 %v53_v30, %v52_v29 }
 0x190   :  { %v55_v32 = vrot.slane %v54_v31, 2 }
 0x192   :  { %v56_v33 = vadd.f32 %v55_v32, %v54_v31 }
 0x194   :  { %v57_v34 = vrot.slane %v56_v33, 1 }
 0x196   :  { %v58_v35 = vadd.f32 %v57_v34, %v56_v33 }
 0x198   :  { %78 = vpush %v58_v35 }
 0x1c9   :  { %s79_s20 = spop %78 }
 0x1ca   :  { %v60_v36 = vstv %s79_s20 }
 0x1cb   :  { %61 = vst [vmem:[#allocation2] sm:$0xff] %v60_v36 }
 0x1cc   :  { %72 = dma.vmem_to_hbm [thread:$0]  %s68_s17, 128, %s70_s19, [#allocation3]  }
 0x1cd   :  { %113 = dma.done.wait [#allocation3], 128  }
 0x1ce   :  { %114 = vsyncadd [#allocation3], 4294967168 }
 0x1cf   :  { %77 = vsyncpa [#allocation3], 1 }

</bundles_post_ra>
